<compile_context>
chip_gen: v5e
topology: v5e:2x2
jax: 0.10.0
libtpu: 0.0.40
codegen_flags: <defaults>
</compile_context>

<pallas_src>
import math
import numpy as np
import jax
import jax.numpy as jnp
from jax.experimental import pallas as pl
from jax.experimental.pallas import tpu as pltpu

POOL = 12        # AdaptiveAvgPool target used by H4_Module
BN_EPS = 1e-5
LANE = 128
SUBLANE = 8


# ---------------------------------------------------------------- glue helpers
def adaptive_pool_matrix(out_size, in_size):
    """P[i, j] such that pooled[i] = sum_j P[i, j] * x[j]  (AdaptiveAvgPool1d)."""
    P = np.zeros((out_size, in_size), dtype=np.float32)
    for i in range(out_size):
        s = (i * in_size) // out_size
        a = (i + 1) * in_size
        e = -((-a) // out_size)          # ceil division
        P[i, s:e] = 1.0 / (e - s)
    return P


def bilinear_matrix(out_size, in_size):
    """U[i, k]: 1-D bilinear (align_corners=False, PyTorch) resampling weights."""
    U = np.zeros((out_size, in_size), dtype=np.float32)
    scale = in_size / out_size
    for i in range(out_size):
        src = max((i + 0.5) * scale - 0.5, 0.0)
        i0 = min(int(np.floor(src)), in_size - 1)
        i1 = min(i0 + 1, in_size - 1)
        lam = src - i0
        U[i, i0] += 1.0 - lam
        U[i, i1] += lam
    return U


def _vmem_cap_bytes():
    """~7/8 of physical VMEM (128 MiB on v5e/v6e, 64 MiB on v7x)."""
    phys = 128 * 2**20
    try:
        phys = int(pltpu.get_tpu_info().vmem_capacity_bytes)
    except Exception:
        pass
    if phys < (16 << 20):                 # defensive: unexpected / zero value
        phys = 128 * 2**20
    return (phys * 7) // 8


# ------------------------------------------------------------------ the kernel
def h4_kernel(x_ref, a_ref, g_ref, w_ref, s_ref, bias_ref, o_ref):
    # x: nb packed batch items stacked on the channel/sublane axis, flattened
    # (lane-padded) H*W on the lane axis.
    x = x_ref[0]                                                 # (Cb, HWp)

    # Both adaptive average pools in ONE MXU matmul (mean factors pre-folded):
    # columns 0:12 = AdaptiveAvgPool2d((12,1)), columns 12:24 = ((1,12)).
    pooled = jnp.dot(x, a_ref[...],
                     preferred_element_type=jnp.float32)         # (Cb, 24)

    # Both 3-tap convs (zero padded) on the length-12 axes.  s_ref[k] is a
    # branch-selecting shift matrix on the packed 24-column axis; w_ref[k] the
    # matching block-diagonal channel-mixing weight with BN scale folded in.
    y = None
    for k in range(6):
        shifted = jnp.dot(pooled, s_ref[k],
                          preferred_element_type=jnp.float32)    # (Cb, 24)
        term = jnp.dot(w_ref[k], shifted,
                       preferred_element_type=jnp.float32)       # (Cb, 24)
        y = term if y is None else y + term
    # Half of the folded BN shift; the fused interp matrix columns sum to 2
    # (one per branch), restoring the full b1+b2 shift after the matmul.
    y = y + bias_ref[...]                                        # (Cb, 24)

    # Both bilinear interpolations + expand back to the flat (H,W) layout plus
    # the BN shift: ONE (Cb,24)x(24,HWp) MXU matmul.
    x3 = jnp.dot(y, g_ref[...], preferred_element_type=jnp.float32)  # (Cb, HWp)

    # Final multiply in f32, single downcast (for f32 inputs the cast is free).
    o_ref[0] = (x.astype(jnp.float32) * x3).astype(o_ref.dtype)


# ------------------------------------------------------------------ wrapper
def h4_forward(x, params):
    n, c, h, w = x.shape
    cout, cin = params["conv1_w"].shape[:2]
    assert cout == c and cin == c, "x * x3 requires inplanes == outplanes"
    hw = h * w
    hwp = ((hw + LANE - 1) // LANE) * LANE        # lane-pad flat spatial axis

    # Pack nb batch items per grid step so the sublane (channel) axis of the
    # big block is a multiple of 8 -> full vreg occupancy.
    nb = 1 if c % SUBLANE == 0 else SUBLANE // math.gcd(c, SUBLANE)
    n_pad = (-n) % nb
    nblk = (n + n_pad) // nb
    cb = nb * c

    # ---- static pooling / interpolation matrices (numpy, f32) ----
    P_H = adaptive_pool_matrix(POOL, h)           # (12, H)
    P_W = adaptive_pool_matrix(POOL, w)           # (12, W)
    U_H = bilinear_matrix(h, POOL)                # (H, 12)
    U_W = bilinear_matrix(w, POOL)                # (W, 12)

    # Both adaptive pools fused into one (HWp, 24) matrix on the flat spatial
    # axis, with the 1/W resp. 1/H means folded in.  Padded rows are zero.
    a1 = np.repeat((P_H.T / w)[:, None, :], w, axis=1).reshape(hw, POOL)
    a2 = np.tile((P_W.T / h)[None, :, :], (h, 1, 1)).reshape(hw, POOL)
    a_pack = np.zeros((hwp, 2 * POOL), np.float32)
    a_pack[:hw, :POOL] = a1
    a_pack[:hw, POOL:] = a2

    # Both interpolation(+expand) matrices fused into one (24, HWp) matrix.
    g1 = np.repeat(U_H.T[:, :, None], w, axis=2).reshape(POOL, hw)
    g2 = np.tile(U_W.T[:, None, :], (1, h, 1)).reshape(POOL, hw)
    g_pack = np.zeros((2 * POOL, hwp), np.float32)
    g_pack[:POOL, :hw] = g1
    g_pack[POOL:, :hw] = g2

    # 3-tap shift matrices on the length-12 axis (zero padded conv), lifted to
    # the packed 24-column axis with branch selection baked in:
    #   taps 0..2 act on cols 0:12 (conv1 branch), 3..5 on cols 12:24 (conv2).
    S = np.zeros((3, POOL, POOL), np.float32)
    for k in range(3):
        for i in range(POOL):
            j = i + k - 1
            if 0 <= j < POOL:
                S[k, j, i] = 1.0
    s_pack = np.zeros((6, 2 * POOL, 2 * POOL), np.float32)
    for k in range(3):
        s_pack[k, :POOL, :POOL] = S[k]
        s_pack[3 + k, POOL:, POOL:] = S[k]

    # ---- fold BN (inference) ----
    s1 = params["gamma1"] / jnp.sqrt(params["var1"] + BN_EPS)   # (C,)
    b1 = params["beta1"] - params["mean1"] * s1
    s2 = params["gamma2"] / jnp.sqrt(params["var2"] + BN_EPS)
    b2 = params["beta2"] - params["mean2"] * s2

    # conv weights (Cout,Cin,3,1)/(Cout,Cin,1,3) -> (3, Cout, Cin) with the BN
    # scale folded into the output-channel axis.
    w1s = (jnp.transpose(params["conv1_w"][:, :, :, 0], (2, 0, 1))
           * s1[None, :, None]).astype(jnp.float32)
    w2s = (jnp.transpose(params["conv2_w"][:, :, 0, :], (2, 0, 1))
           * s2[None, :, None]).astype(jnp.float32)

    # Block-diagonal over the nb packed samples; both branches in one pack.
    if nb > 1:
        eye = jnp.eye(nb, dtype=jnp.float32)
        w1s = jnp.einsum('st,kij->ksitj', eye, w1s).reshape(3, cb, cb)
        w2s = jnp.einsum('st,kij->ksitj', eye, w2s).reshape(3, cb, cb)
    w_pack = jnp.concatenate([w1s, w2s], axis=0)                # (6, Cb, Cb)

    # Half the folded BN shift per channel (see kernel comment).
    bias_half = (0.5 * (b1 + b2)).astype(jnp.float32)           # (C,)
    bias2d = jnp.tile(bias_half, (nb,)).reshape(cb, 1)          # (Cb, 1)

    # Device constants.  Pool pack in x.dtype so the big pooling matmul does
    # not promote its streaming operand (accumulation still f32 on the MXU).
    # TODO(synk): on v7x (bf16-only MXU) bf16 a_pack/g_pack would halve MXU
    #             passes for f32 inputs, at the cost of ~1e-2 relative error.
    a_j = jnp.asarray(a_pack, dtype=x.dtype)
    g_j = jnp.asarray(g_pack, dtype=jnp.float32)
    s_j = jnp.asarray(s_pack, dtype=jnp.float32)

    # Lane-dense flat layout; pad HW to a lane multiple and pack nb samples on
    # the sublane axis (the leading-dim reshapes are metadata-only).
    x3d = x.reshape(n, c, hw)
    if hwp != hw:
        # TODO(synk): pad/final-slice cost one extra HBM round trip of x/out;
        #             only a net win when the masked-store tail dominates.
        x3d = jnp.pad(x3d, ((0, 0), (0, 0), (0, hwp - hw)))
    if n_pad:
        x3d = jnp.pad(x3d, ((0, n_pad), (0, 0), (0, 0)))
    xblk = x3d.reshape(nblk, cb, hwp)

    def full_spec(arr):
        nd = arr.ndim
        # TODO(synk): pipeline_mode=pl.Buffered(1) would single-buffer these
        #             never-revisited constants and save VMEM on v7x.
        return pl.BlockSpec(arr.shape, lambda i, _nd=nd: (0,) * _nd)

    # VMEM budget: double-buffered in/out blocks + constants + f32
    # intermediates (x3, plus a widened x for non-f32 inputs) + slack, capped
    # at ~7/8 of physical VMEM.
    itemsize = jnp.dtype(x.dtype).itemsize
    block_bytes = cb * hwp * itemsize
    consts = (a_j, g_j, s_j, w_pack, bias2d)
    const_bytes = sum(int(np.prod(a.shape)) * jnp.dtype(a.dtype).itemsize
                      for a in consts)
    f32_interm = cb * hwp * 4 * (1 if x.dtype == jnp.float32 else 2)
    est = 4 * block_bytes + 2 * const_bytes + f32_interm + (2 << 20)
    vmem_limit = int(min(_vmem_cap_bytes(), max(16 * 2**20, est)))

    cost = pl.CostEstimate(
        flops=int(nblk * cb * hwp * (8 * POOL + 3)),   # 2 big matmuls + multiply
        transcendentals=0,
        bytes_accessed=int(2 * nblk * block_bytes + const_bytes))

    outblk = pl.pallas_call(
        h4_kernel,
        out_shape=jax.ShapeDtypeStruct((nblk, cb, hwp), x.dtype),
        grid=(nblk,),
        in_specs=[
            pl.BlockSpec((1, cb, hwp), lambda i: (i, 0, 0)),
            full_spec(a_j), full_spec(g_j),
            full_spec(w_pack), full_spec(s_j), full_spec(bias2d),
        ],
        out_specs=pl.BlockSpec((1, cb, hwp), lambda i: (i, 0, 0)),
        compiler_params=pltpu.CompilerParams(
            dimension_semantics=("parallel",),
            vmem_limit_bytes=vmem_limit),
        cost_estimate=cost,
    )(xblk, a_j, g_j, w_pack, s_j, bias2d)

    out = outblk.reshape(nblk * nb, c, hwp)[:n, :, :hw]
    return out.reshape(n, c, h, w)


# ------------------------------------------------------------------ reference
def h4_reference(x, params):
    n, c, h, w = x.shape
    p1 = jnp.asarray(adaptive_pool_matrix(POOL, h))           # (12, H)
    p2 = jnp.asarray(adaptive_pool_matrix(POOL, w))           # (12, W)
    u1 = jnp.asarray(bilinear_matrix(h, POOL))                # (H, 12)
    u2 = jnp.asarray(bilinear_matrix(w, POOL))                # (W, 12)

    pooled1 = jnp.einsum('nchw,ih->nci', x, p1) / w           # (N, C, 12)
    pooled2 = jnp.einsum('nchw,jw->ncj', x, p2) / h           # (N, C, 12)

    y1 = jax.lax.conv_general_dilated(
        pooled1[..., None], params["conv1_w"], (1, 1), ((1, 1), (0, 0)),
        dimension_numbers=('NCHW', 'OIHW', 'NCHW'))[..., 0]
    y2 = jax.lax.conv_general_dilated(
        pooled2[:, :, None, :], params["conv2_w"], (1, 1), ((0, 0), (1, 1)),
        dimension_numbers=('NCHW', 'OIHW', 'NCHW'))[:, :, 0, :]

    s1 = params["gamma1"] / jnp.sqrt(params["var1"] + BN_EPS)
    y1 = (y1 - params["mean1"][None, :, None]) * s1[None, :, None] \
         + params["beta1"][None, :, None]
    s2 = params["gamma2"] / jnp.sqrt(params["var2"] + BN_EPS)
    y2 = (y2 - params["mean2"][None, :, None]) * s2[None, :, None] \
         + params["beta2"][None, :, None]

    a = jnp.einsum('nck,hk->nch', y1, u1)
    b = jnp.einsum('nck,wk->ncw', y2, u2)
    return x * (a[:, :, :, None] + b[:, :, None, :])


# ------------------------------------------------------------------ main
if __name__ == "__main__":
    N, C, H, W = 2, 4, 16, 16                     # inplanes == outplanes == 4
    key = jax.random.PRNGKey(0)
    ks = jax.random.split(key, 12)

    x = jax.random.normal(ks[0], (N, C, H, W), jnp.float32)
    params = dict(
        conv1_w=0.1 * jax.random.normal(ks[1], (C, C, 3, 1), jnp.float32),
        conv2_w=0.1 * jax.random.normal(ks[2], (C, C, 1, 3), jnp.float32),
        gamma1=1.0 + 0.1 * jax.random.normal(ks[3], (C,), jnp.float32),
        beta1=0.1 * jax.random.normal(ks[4], (C,), jnp.float32),
        mean1=0.1 * jax.random.normal(ks[5], (C,), jnp.float32),
        var1=jax.random.uniform(ks[6], (C,), jnp.float32, 0.5, 1.5),
        gamma2=1.0 + 0.1 * jax.random.normal(ks[7], (C,), jnp.float32),
        beta2=0.1 * jax.random.normal(ks[8], (C,), jnp.float32),
        mean2=0.1 * jax.random.normal(ks[9], (C,), jnp.float32),
        var2=jax.random.uniform(ks[10], (C,), jnp.float32, 0.5, 1.5),
    )

    out = jax.block_until_ready(h4_forward(x, params))
    ref = h4_reference(x, params)
    assert out.shape == (N, C, H, W)
    np.testing.assert_allclose(np.asarray(out), np.asarray(ref),
                               rtol=1e-4, atol=1e-4)
    print("KERNEL_OK")
</pallas_src>

<mosaic_0001>
module attributes {stable_mosaic.version = 11 : i64} {
  func.func @h4_kernel(%arg0: i32, %arg1: memref<1x8x256xf32, #tpu.memory_space<vmem>>, %arg2: memref<256x24xf32, #tpu.memory_space<vmem>>, %arg3: memref<24x256xf32, #tpu.memory_space<vmem>>, %arg4: memref<6x8x8xf32, #tpu.memory_space<vmem>>, %arg5: memref<6x24x24xf32, #tpu.memory_space<vmem>>, %arg6: memref<8x1xf32, #tpu.memory_space<vmem>>, %arg7: memref<1x8x256xf32, #tpu.memory_space<vmem>>) attributes {dimension_semantics = [#tpu.dimension_semantics<parallel>], iteration_bounds = array<i64: 1>, scalar_prefetch = 0 : i64, scratch_operands = 0 : i64, tpu.core_type = #tpu.core_type<tc>, window_params = [{transform_indices = @transform_0, window_bounds = array<i64: 1, 8, 256>}, {pipeline_mode = #tpu.pipeline_mode<synchronous>, transform_indices = @transform_1, window_bounds = array<i64: 256, 24>}, {pipeline_mode = #tpu.pipeline_mode<synchronous>, transform_indices = @transform_2, window_bounds = array<i64: 24, 256>}, {pipeline_mode = #tpu.pipeline_mode<synchronous>, transform_indices = @transform_3, window_bounds = array<i64: 6, 8, 8>}, {pipeline_mode = #tpu.pipeline_mode<synchronous>, transform_indices = @transform_4, window_bounds = array<i64: 6, 24, 24>}, {pipeline_mode = #tpu.pipeline_mode<synchronous>, transform_indices = @transform_5, window_bounds = array<i64: 8, 1>}, {transform_indices = @transform_6, window_bounds = array<i64: 1, 8, 256>}]} {
    %c0 = arith.constant 0 : index
    %c0_0 = arith.constant 0 : index
    %c0_1 = arith.constant 0 : index
    %0 = vector.load %arg1[%c0, %c0_0, %c0_1] : memref<1x8x256xf32, #tpu.memory_space<vmem>>, vector<1x8x256xf32>
    %1 = vector.shape_cast %0 : vector<1x8x256xf32> to vector<8x256xf32>
    %c0_2 = arith.constant 0 : index
    %c0_3 = arith.constant 0 : index
    %2 = vector.load %arg2[%c0_2, %c0_3] : memref<256x24xf32, #tpu.memory_space<vmem>>, vector<256x24xf32>
    %cst = arith.constant dense<0.000000e+00> : vector<8x24xf32>
    %3 = tpu.matmul %1, %2, %cst {dimension_numbers = #tpu.dot_dimension_numbers<[1], [0], [0], [1], [0, 0, 1, 1], [], []>} : vector<8x256xf32>, vector<256x24xf32>, vector<8x24xf32> -> vector<8x24xf32>
    %c0_4 = arith.constant 0 : index
    %c0_5 = arith.constant 0 : index
    %c0_6 = arith.constant 0 : index
    %4 = vector.load %arg5[%c0_4, %c0_5, %c0_6] : memref<6x24x24xf32, #tpu.memory_space<vmem>>, vector<1x24x24xf32>
    %5 = vector.shape_cast %4 : vector<1x24x24xf32> to vector<24x24xf32>
    %cst_7 = arith.constant dense<0.000000e+00> : vector<8x24xf32>
    %6 = tpu.matmul %3, %5, %cst_7 {dimension_numbers = #tpu.dot_dimension_numbers<[1], [0], [0], [1], [0, 0, 1, 1], [], []>} : vector<8x24xf32>, vector<24x24xf32>, vector<8x24xf32> -> vector<8x24xf32>
    %c0_8 = arith.constant 0 : index
    %c0_9 = arith.constant 0 : index
    %c0_10 = arith.constant 0 : index
    %7 = vector.load %arg4[%c0_8, %c0_9, %c0_10] : memref<6x8x8xf32, #tpu.memory_space<vmem>>, vector<1x8x8xf32>
    %8 = vector.shape_cast %7 : vector<1x8x8xf32> to vector<8x8xf32>
    %cst_11 = arith.constant dense<0.000000e+00> : vector<8x24xf32>
    %9 = tpu.matmul %8, %6, %cst_11 {dimension_numbers = #tpu.dot_dimension_numbers<[1], [0], [0], [1], [0, 0, 1, 1], [], []>} : vector<8x8xf32>, vector<8x24xf32>, vector<8x24xf32> -> vector<8x24xf32>
    %c1 = arith.constant 1 : index
    %c0_12 = arith.constant 0 : index
    %c0_13 = arith.constant 0 : index
    %10 = vector.load %arg5[%c1, %c0_12, %c0_13] : memref<6x24x24xf32, #tpu.memory_space<vmem>>, vector<1x24x24xf32>
    %11 = vector.shape_cast %10 : vector<1x24x24xf32> to vector<24x24xf32>
    %cst_14 = arith.constant dense<0.000000e+00> : vector<8x24xf32>
    %12 = tpu.matmul %3, %11, %cst_14 {dimension_numbers = #tpu.dot_dimension_numbers<[1], [0], [0], [1], [0, 0, 1, 1], [], []>} : vector<8x24xf32>, vector<24x24xf32>, vector<8x24xf32> -> vector<8x24xf32>
    %c1_15 = arith.constant 1 : index
    %c0_16 = arith.constant 0 : index
    %c0_17 = arith.constant 0 : index
    %13 = vector.load %arg4[%c1_15, %c0_16, %c0_17] : memref<6x8x8xf32, #tpu.memory_space<vmem>>, vector<1x8x8xf32>
    %14 = vector.shape_cast %13 : vector<1x8x8xf32> to vector<8x8xf32>
    %cst_18 = arith.constant dense<0.000000e+00> : vector<8x24xf32>
    %15 = tpu.matmul %14, %12, %cst_18 {dimension_numbers = #tpu.dot_dimension_numbers<[1], [0], [0], [1], [0, 0, 1, 1], [], []>} : vector<8x8xf32>, vector<8x24xf32>, vector<8x24xf32> -> vector<8x24xf32>
    %16 = arith.addf %9, %15 : vector<8x24xf32>
    %c2 = arith.constant 2 : index
    %c0_19 = arith.constant 0 : index
    %c0_20 = arith.constant 0 : index
    %17 = vector.load %arg5[%c2, %c0_19, %c0_20] : memref<6x24x24xf32, #tpu.memory_space<vmem>>, vector<1x24x24xf32>
    %18 = vector.shape_cast %17 : vector<1x24x24xf32> to vector<24x24xf32>
    %cst_21 = arith.constant dense<0.000000e+00> : vector<8x24xf32>
    %19 = tpu.matmul %3, %18, %cst_21 {dimension_numbers = #tpu.dot_dimension_numbers<[1], [0], [0], [1], [0, 0, 1, 1], [], []>} : vector<8x24xf32>, vector<24x24xf32>, vector<8x24xf32> -> vector<8x24xf32>
    %c2_22 = arith.constant 2 : index
    %c0_23 = arith.constant 0 : index
    %c0_24 = arith.constant 0 : index
    %20 = vector.load %arg4[%c2_22, %c0_23, %c0_24] : memref<6x8x8xf32, #tpu.memory_space<vmem>>, vector<1x8x8xf32>
    %21 = vector.shape_cast %20 : vector<1x8x8xf32> to vector<8x8xf32>
    %cst_25 = arith.constant dense<0.000000e+00> : vector<8x24xf32>
    %22 = tpu.matmul %21, %19, %cst_25 {dimension_numbers = #tpu.dot_dimension_numbers<[1], [0], [0], [1], [0, 0, 1, 1], [], []>} : vector<8x8xf32>, vector<8x24xf32>, vector<8x24xf32> -> vector<8x24xf32>
    %23 = arith.addf %16, %22 : vector<8x24xf32>
    %c3 = arith.constant 3 : index
    %c0_26 = arith.constant 0 : index
    %c0_27 = arith.constant 0 : index
    %24 = vector.load %arg5[%c3, %c0_26, %c0_27] : memref<6x24x24xf32, #tpu.memory_space<vmem>>, vector<1x24x24xf32>
    %25 = vector.shape_cast %24 : vector<1x24x24xf32> to vector<24x24xf32>
    %cst_28 = arith.constant dense<0.000000e+00> : vector<8x24xf32>
    %26 = tpu.matmul %3, %25, %cst_28 {dimension_numbers = #tpu.dot_dimension_numbers<[1], [0], [0], [1], [0, 0, 1, 1], [], []>} : vector<8x24xf32>, vector<24x24xf32>, vector<8x24xf32> -> vector<8x24xf32>
    %c3_29 = arith.constant 3 : index
    %c0_30 = arith.constant 0 : index
    %c0_31 = arith.constant 0 : index
    %27 = vector.load %arg4[%c3_29, %c0_30, %c0_31] : memref<6x8x8xf32, #tpu.memory_space<vmem>>, vector<1x8x8xf32>
    %28 = vector.shape_cast %27 : vector<1x8x8xf32> to vector<8x8xf32>
    %cst_32 = arith.constant dense<0.000000e+00> : vector<8x24xf32>
    %29 = tpu.matmul %28, %26, %cst_32 {dimension_numbers = #tpu.dot_dimension_numbers<[1], [0], [0], [1], [0, 0, 1, 1], [], []>} : vector<8x8xf32>, vector<8x24xf32>, vector<8x24xf32> -> vector<8x24xf32>
    %30 = arith.addf %23, %29 : vector<8x24xf32>
    %c4 = arith.constant 4 : index
    %c0_33 = arith.constant 0 : index
    %c0_34 = arith.constant 0 : index
    %31 = vector.load %arg5[%c4, %c0_33, %c0_34] : memref<6x24x24xf32, #tpu.memory_space<vmem>>, vector<1x24x24xf32>
    %32 = vector.shape_cast %31 : vector<1x24x24xf32> to vector<24x24xf32>
    %cst_35 = arith.constant dense<0.000000e+00> : vector<8x24xf32>
    %33 = tpu.matmul %3, %32, %cst_35 {dimension_numbers = #tpu.dot_dimension_numbers<[1], [0], [0], [1], [0, 0, 1, 1], [], []>} : vector<8x24xf32>, vector<24x24xf32>, vector<8x24xf32> -> vector<8x24xf32>
    %c4_36 = arith.constant 4 : index
    %c0_37 = arith.constant 0 : index
    %c0_38 = arith.constant 0 : index
    %34 = vector.load %arg4[%c4_36, %c0_37, %c0_38] : memref<6x8x8xf32, #tpu.memory_space<vmem>>, vector<1x8x8xf32>
    %35 = vector.shape_cast %34 : vector<1x8x8xf32> to vector<8x8xf32>
    %cst_39 = arith.constant dense<0.000000e+00> : vector<8x24xf32>
    %36 = tpu.matmul %35, %33, %cst_39 {dimension_numbers = #tpu.dot_dimension_numbers<[1], [0], [0], [1], [0, 0, 1, 1], [], []>} : vector<8x8xf32>, vector<8x24xf32>, vector<8x24xf32> -> vector<8x24xf32>
    %37 = arith.addf %30, %36 : vector<8x24xf32>
    %c5 = arith.constant 5 : index
    %c0_40 = arith.constant 0 : index
    %c0_41 = arith.constant 0 : index
    %38 = vector.load %arg5[%c5, %c0_40, %c0_41] : memref<6x24x24xf32, #tpu.memory_space<vmem>>, vector<1x24x24xf32>
    %39 = vector.shape_cast %38 : vector<1x24x24xf32> to vector<24x24xf32>
    %cst_42 = arith.constant dense<0.000000e+00> : vector<8x24xf32>
    %40 = tpu.matmul %3, %39, %cst_42 {dimension_numbers = #tpu.dot_dimension_numbers<[1], [0], [0], [1], [0, 0, 1, 1], [], []>} : vector<8x24xf32>, vector<24x24xf32>, vector<8x24xf32> -> vector<8x24xf32>
    %c5_43 = arith.constant 5 : index
    %c0_44 = arith.constant 0 : index
    %c0_45 = arith.constant 0 : index
    %41 = vector.load %arg4[%c5_43, %c0_44, %c0_45] : memref<6x8x8xf32, #tpu.memory_space<vmem>>, vector<1x8x8xf32>
    %42 = vector.shape_cast %41 : vector<1x8x8xf32> to vector<8x8xf32>
    %cst_46 = arith.constant dense<0.000000e+00> : vector<8x24xf32>
    %43 = tpu.matmul %42, %40, %cst_46 {dimension_numbers = #tpu.dot_dimension_numbers<[1], [0], [0], [1], [0, 0, 1, 1], [], []>} : vector<8x8xf32>, vector<8x24xf32>, vector<8x24xf32> -> vector<8x24xf32>
    %44 = arith.addf %37, %43 : vector<8x24xf32>
    %c0_47 = arith.constant 0 : index
    %c0_48 = arith.constant 0 : index
    %45 = vector.load %arg6[%c0_47, %c0_48] : memref<8x1xf32, #tpu.memory_space<vmem>>, vector<8x1xf32>
    %46 = vector.broadcast %45 : vector<8x1xf32> to vector<8x24xf32>
    %47 = arith.addf %44, %46 : vector<8x24xf32>
    %c0_49 = arith.constant 0 : index
    %c0_50 = arith.constant 0 : index
    %48 = vector.load %arg3[%c0_49, %c0_50] : memref<24x256xf32, #tpu.memory_space<vmem>>, vector<24x256xf32>
    %cst_51 = arith.constant dense<0.000000e+00> : vector<8x256xf32>
    %49 = tpu.matmul %47, %48, %cst_51 {dimension_numbers = #tpu.dot_dimension_numbers<[1], [0], [0], [1], [0, 0, 1, 1], [], []>} : vector<8x24xf32>, vector<24x256xf32>, vector<8x256xf32> -> vector<8x256xf32>
    %50 = arith.mulf %1, %49 : vector<8x256xf32>
    %c0_52 = arith.constant 0 : index
    %c0_53 = arith.constant 0 : index
    %c0_54 = arith.constant 0 : index
    %51 = vector.load %arg7[%c0_52, %c0_53, %c0_54] : memref<1x8x256xf32, #tpu.memory_space<vmem>>, vector<1x8x256xf32>
    %52 = vector.shape_cast %51 : vector<1x8x256xf32> to vector<8x256xf32>
    %53 = vector.shape_cast %50 : vector<8x256xf32> to vector<1x8x256xf32>
    tpu.vector_store %arg7[%c0_52, %c0_53, %c0_54], %53 {strides = array<i32>} : memref<1x8x256xf32, #tpu.memory_space<vmem>>, vector<1x8x256xf32>,
    return
  }
  func.func @transform_0(%arg0: i32) -> (i32, i32, i32) {
    %c0_i32 = arith.constant 0 : i32
    %c0_i32_0 = arith.constant 0 : i32
    %c0_i32_1 = arith.constant 0 : i32
    return %arg0, %c0_i32, %c0_i32_0 : i32, i32, i32
  }
  func.func @transform_1(%arg0: i32) -> (i32, i32) {
    %c0_i32 = arith.constant 0 : i32
    %c0_i32_0 = arith.constant 0 : i32
    %c0_i32_1 = arith.constant 0 : i32
    return %c0_i32, %c0_i32_0 : i32, i32
  }
  func.func @transform_2(%arg0: i32) -> (i32, i32) {
    %c0_i32 = arith.constant 0 : i32
    %c0_i32_0 = arith.constant 0 : i32
    %c0_i32_1 = arith.constant 0 : i32
    return %c0_i32, %c0_i32_0 : i32, i32
  }
  func.func @transform_3(%arg0: i32) -> (i32, i32, i32) {
    %c0_i32 = arith.constant 0 : i32
    %c0_i32_0 = arith.constant 0 : i32
    %c0_i32_1 = arith.constant 0 : i32
    %c0_i32_2 = arith.constant 0 : i32
    return %c0_i32, %c0_i32_0, %c0_i32_1 : i32, i32, i32
  }
  func.func @transform_4(%arg0: i32) -> (i32, i32, i32) {
    %c0_i32 = arith.constant 0 : i32
    %c0_i32_0 = arith.constant 0 : i32
    %c0_i32_1 = arith.constant 0 : i32
    %c0_i32_2 = arith.constant 0 : i32
    return %c0_i32, %c0_i32_0, %c0_i32_1 : i32, i32, i32
  }
  func.func @transform_5(%arg0: i32) -> (i32, i32) {
    %c0_i32 = arith.constant 0 : i32
    %c0_i32_0 = arith.constant 0 : i32
    %c0_i32_1 = arith.constant 0 : i32
    return %c0_i32, %c0_i32_0 : i32, i32
  }
  func.func @transform_6(%arg0: i32) -> (i32, i32, i32) {
    %c0_i32 = arith.constant 0 : i32
    %c0_i32_0 = arith.constant 0 : i32
    %c0_i32_1 = arith.constant 0 : i32
    return %arg0, %c0_i32, %c0_i32_0 : i32, i32, i32
  }
}

</mosaic_0001>

<bundles_post_ra>
// kernel: tpu_custom_call.1
= control target key start
LH: loop header
LB: loop body
LE: loop exit
PB: predicated region body
PF: predicated region fallthrough
CT: control target
= control target key end

     0   :  { %s795_s0 = inlined_call_operand.vmem [shape: f32[1,8,256], index: 0, kind: input, shape index: {}]   ;;  %s796_s1 = inlined_call_operand.vmem [shape: f32[256,24], index: 1, kind: input, shape index: {}]   ;;  %s797_s2 = inlined_call_operand.vmem [shape: f32[24,256], index: 2, kind: input, shape index: {}]   ;;  %s798_s3 = inlined_call_operand.vmem [shape: f32[6,8,8], index: 3, kind: input, shape index: {}]   ;;  %s799_s4 = inlined_call_operand.vmem [shape: f32[6,24,24], index: 4, kind: input, shape index: {}]   ;;  %s800_s5 = inlined_call_operand.vmem [shape: f32[8,1], index: 5, kind: input, shape index: {}]   ;;  %s801_s6 = inlined_call_operand.hbm [shape: f32[1,8,256], index: 6, kind: output, shape index: {}]  }
   0x1   :  { %v41_v0 = vld [vmem:[%s796_s1 + $0x78] sm:$0xff]  ;;  %v40_v2 = vld [vmem:[%s796_s1 + $0x70] sm:$0xff]  ;;  %v39_v4 = vld [vmem:[%s796_s1 + $0x68] sm:$0xff] }
   0x2   :  { %v57_v1 = vld [vmem:[%s796_s1 + $0xf8] sm:$0xff]  ;;  %58 = vmatpush.msra.mxu0 %v41_v0  ;;  %v56_v3 = vld [vmem:[%s796_s1 + $0xf0] sm:$0xff]  ;;  %v55_v5 = vld [vmem:[%s796_s1 + $0xe8] sm:$0xff] }
   0x3   :  { %78 = vmatpush.msra.mxu1 %v57_v1  ;;  %v38_v6 = vld [vmem:[%s796_s1 + $0x60] sm:$0xff]  ;;  %v37_v8 = vld [vmem:[%s796_s1 + $0x58] sm:$0xff]  ;;  %v36_v10 = vld [vmem:[%s796_s1 + $0x50] sm:$0xff] }
   0x4   :  { %59 = vmatpush.msra.mxu0 %v40_v2  ;;  %v54_v7 = vld [vmem:[%s796_s1 + $0xe0] sm:$0xff]  ;;  %v53_v9 = vld [vmem:[%s796_s1 + $0xd8] sm:$0xff]  ;;  %v52_v11 = vld [vmem:[%s796_s1 + $0xd0] sm:$0xff] }
   0x5   :  { %79 = vmatpush.msra.mxu1 %v56_v3  ;;  %v35_v12 = vld [vmem:[%s796_s1 + $0x48] sm:$0xff]  ;;  %v100_v14 = vld [vmem:[%s799_s4 + $0x10] sm:$0xff]  ;;  %v34_v16 = vld [vmem:[%s796_s1 + $0x40] sm:$0xff] }
   0x6   :  { %60 = vmatpush.msra.mxu0 %v39_v4  ;;  %v51_v13 = vld [vmem:[%s796_s1 + $0xc8] sm:$0xff]  ;;  %v50_v17 = vld [vmem:[%s796_s1 + $0xc0] sm:$0xff]  ;;  %118 = vmatpush.msra.mxu2 %v100_v14 }
   0x7   :  { %80 = vmatpush.msra.mxu1 %v55_v5  ;;  %v478_v15 = vld [vmem:[%s799_s4 + $0x28] sm:$0xff] }
   0x8   :  { %61 = vmatpush.msra.mxu0 %v38_v6  ;;  %143 = vmatpush.msra.mxu3 %v478_v15 }
   0x9   :  { %81 = vmatpush.msra.mxu1 %v54_v7 }
   0xa   :  { %62 = vmatpush.msra.mxu0 %v37_v8 }
   0xb   :  { %82 = vmatpush.msra.mxu1 %v53_v9 }
   0xc   :  { %63 = vmatpush.msra.mxu0 %v36_v10 }
   0xd   :  { %83 = vmatpush.msra.mxu1 %v52_v11 }
   0xe   :  { %11 = vsyncpa [#allocation3], 0  ;;  %64 = vmatpush.msra.mxu0 %v35_v12  ;;  %v33_v18 = vld [vmem:[%s796_s1 + $0x38] sm:$0xff]  ;;  %v32_v20 = vld [vmem:[%s796_s1 + $0x30] sm:$0xff]  ;;  %vm101_vm0 = vcmask 195584   ;;  %vm152_vm1 = vcmask 64512  }
   0xf   :  { %84 = vmatpush.msra.mxu1 %v51_v13  ;;  %v49_v19 = vld [vmem:[%s796_s1 + $0xb8] sm:$0xff]  ;;  %v48_v21 = vld [vmem:[%s796_s1 + $0xb0] sm:$0xff]  ;;  %v31_v22 = vld [vmem:[%s796_s1 + $0x28] sm:$0xff]  ;;  %v538_v62 = vmov 0   ;;  %s539_s23 = smov [#allocation2]  }
  0x10   :  { %65 = vmatpush.msra.mxu0 %v34_v16  ;;  %v47_v23 = vld [vmem:[%s796_s1 + $0xa8] sm:$0xff]  ;;  %v30_v24 = vld [vmem:[%s796_s1 + $0x20] sm:$0xff]  ;;  %v29_v26 = vld [vmem:[%s796_s1 + $0x18] sm:$0xff]  ;;  %511 = vset.pattern.permute.xlu0 %v538_v62 }
  0x11   :  { %85 = vmatpush.msra.mxu1 %v50_v17  ;;  %v46_v25 = vld [vmem:[%s796_s1 + $0xa0] sm:$0xff]  ;;  %v45_v27 = vld [vmem:[%s796_s1 + $0x98] sm:$0xff]  ;;  %v28_v28 = vld [vmem:[%s796_s1 + $0x10] sm:$0xff] }
  0x12   :  { %66 = vmatpush.msra.mxu0 %v33_v18  ;;  %v44_v29 = vld [vmem:[%s796_s1 + $0x90] sm:$0xff]  ;;  %v27_v30 = vld [vmem:[%s796_s1 + $0x8] sm:$0xff]  ;;  %v26_v32 = vld [vmem:[%s796_s1] sm:$0xff] }
  0x13   :  { %86 = vmatpush.msra.mxu1 %v49_v19  ;;  %v43_v31 = vld [vmem:[%s796_s1 + $0x88] sm:$0xff]  ;;  %v42_v33 = vld [vmem:[%s796_s1 + $0x80] sm:$0xff]  ;;  %v476_v41 = vld [vmem:[%s799_s4 + $0x18] sm:$0xff] }
  0x14   :  { %67 = vmatpush.msra.mxu0 %v32_v20  ;;  %v680_v34 = vld [vmem:[%s795_s0] sm:$0xff]  ;;  %v685_v35 = vld [vmem:[%s795_s0 + $0x8] sm:$0xff]  ;;  %v501_v42 = vld [vmem:[%s799_s4 + $0x78] sm:$0xff]  ;;  %s466_s0 = sshll.u32 %s801_s6, 4  ;;  %s467_s0 = int_to_ptr.hbm [resolvable:$true] %s466_s0 }
  0x15   :  { %87 = vmatpush.msra.mxu1 %v48_v21  ;;  %v503_v36 = vld [vmem:[%s799_s4 + $0x88] sm:$0xff]  ;;  %v477_v38 = vld [vmem:[%s799_s4 + $0x20] sm:$0xff]  ;;  %v484_v52 = vld [vmem:[%s799_s4 + $0x38] sm:$0xff] }
  0x16   :  { %68 = vmatpush.msra.mxu0 %v31_v22  ;;  %v99_v37 = vld [vmem:[%s799_s4 + $0x8] sm:$0xff]  ;;  %v502_v39 = vld [vmem:[%s799_s4 + $0x80] sm:$0xff]  ;;  %144 = vmatpush.msra.mxu3 %v477_v38  ;;  %v483_v53 = vld [vmem:[%s799_s4 + $0x30] sm:$0xff] }
  0x17   :  { %88 = vmatpush.msra.mxu1 %v47_v23  ;;  %119 = vmatpush.msra.mxu2 %v99_v37  ;;  %v98_v40 = vld [vmem:[%s799_s4] sm:$0xff]  ;;  %v480_v47 = vld [vmem:[%s798_s3 + $0x8] sm:$0xff]  ;;  %v491_v54 = vld [vmem:[%s799_s4 + $0x58] sm:$0xff] }
  0x18   :  { %69 = vmatpush.msra.mxu0 %v30_v24  ;;  %145 = vmatpush.msra.mxu3 %v476_v41  ;;  %v125_v48 = vld [vmem:[%s798_s3] sm:$0xff]  ;;  %v490_v55 = vld [vmem:[%s799_s4 + $0x50] sm:$0xff]  ;;  %v489_v56 = vld [vmem:[%s799_s4 + $0x48] sm:$0xff] }
  0x19   :  { %89 = vmatpush.msra.mxu1 %v46_v25  ;;  %120 = vmatpush.msra.mxu2 %v98_v40  ;;  %v485_v51 = vld [vmem:[%s799_s4 + $0x40] sm:$0xff]  ;;  %v497_v57 = vld [vmem:[%s799_s4 + $0x70] sm:$0xff]  ;;  %v496_v58 = vld [vmem:[%s799_s4 + $0x68] sm:$0xff] }
  0x1a   :  { %70 = vmatpush.msra.mxu0 %v29_v26  ;;  %v495_v59 = vld [vmem:[%s799_s4 + $0x60] sm:$0xff]  ;;  %v505_v60 = vld [vmem:[%s798_s3 + $0x28] sm:$0xff]  ;;  %v487_v0 = vld [vmem:[%s798_s3 + $0x10] sm:$0xff] }
  0x1b   :  { %90 = vmatpush.msra.mxu1 %v45_v27  ;;  %v399_v61 = vld [vmem:[%s800_s5] sm:$0xff]  ;;  %v493_v2 = vld [vmem:[%s798_s3 + $0x18] sm:$0xff]  ;;  %v411_v7 = vld [vmem:[%s797_s2 + $0x28] sm:$0xff] }
  0x1c   :  { %71 = vmatpush.msra.mxu0 %v28_v28  ;;  %402 = vperm.xlu0 %511, %v399_v61   ;;  %v499_v4 = vld [vmem:[%s798_s3 + $0x20] sm:$0xff]  ;;  %v408_v8 = vld [vmem:[%s797_s2 + $0x10] sm:$0xff]  ;;  %v409_v9 = vld [vmem:[%s797_s2 + $0x18] sm:$0xff] }
  0x1d   :  { %91 = vmatpush.msra.mxu1 %v44_v29  ;;  %v410_v6 = vld [vmem:[%s797_s2 + $0x20] sm:$0xff]  ;;  %v407_v11 = vld [vmem:[%s797_s2 + $0x8] sm:$0xff] }
  0x1e   :  { %72 = vmatpush.msra.mxu0 %v27_v30  ;;  %v406_v10 = vld [vmem:[%s797_s2] sm:$0xff]  ;;  %s464_s2 = sshll.u32 %s539_s23, 4  ;;  %s465_s2 = int_to_ptr.vmem [resolvable:$true] %s464_s2 }
  0x1f   :  { %92 = vmatpush.msra.mxu1 %v43_v31 }
  0x20   :  { %73 = vmatpush.msra.mxu0 %v26_v32 }
  0x21   :  { %93 = vmatpush.msra.mxu1 %v42_v33  ;;  %74 = vmatmul.f32.vlgmr.msra.gmra.mxu0 %v680_v34 }
  0x22   :  { %94 = vmatmul.f32.vlgmr.msra.gmra.mxu1 %v685_v35  ;;  %366 = vmatpush.msrb.mxu0 %v503_v36 }
  0x24   :  { %367 = vmatpush.msrb.mxu0 %v502_v39 }
  0x26   :  { %368 = vmatpush.msrb.mxu0 %v501_v42 }
  0x8e   :  { %v403_v21 = vpop.permute.xlu0 %402 }
  0x9e   :  { %v75_v43 = vpop.f32.mrf.mxu0 }
  0x9f   :  { %v95_v44 = vpop.f32.mrf.mxu1 }
  0xa0   :  { %v96_v45 = vadd.f32 %v95_v44, %v75_v43 }
  0xa2   :  { %475 = vmatmul.msk.f32.vlgmr.msra.gmra.mxu2 %vm101_vm0, %v96_v45  ;;  %479 = vmatmul.msk.f32.vlgmr.msra.gmra.mxu3 %vm101_vm0, %v96_v45 }
  0xa3   :  { %504 = vmatmul.msk.f32.vlgmr.msrb.gmra.mxu0 %vm101_vm0, %v96_v45 }
 0x120   :  { %v370_v46 = vpop.f32.mrf.mxu0 }
 0x121   :  { %393 = vmatpush.msrb.mxu1 %v370_v46 }
 0x122   :  { %506 = vmatmul.msk.f32.vlgmr.msrb.gmra.mxu1 %vm152_vm1, %v505_v60 }
 0x125   :  { %v122_v49 = vpop.f32.mrf.mxu2  ;;  %v147_v50 = vpop.f32.mrf.mxu3 }
 0x126   :  { %171 = vmatpush.msrb.mxu2 %v147_v50  ;;  %194 = vmatpush.msrb.mxu3 %v122_v49 }
 0x127   :  { %481 = vmatmul.msk.f32.vlgmr.msrb.gmra.mxu2 %vm152_vm1, %v480_v47  ;;  %482 = vmatmul.msk.f32.vlgmr.msrb.gmra.mxu3 %vm152_vm1, %v125_v48 }
 0x128   :  { %216 = vmatpush.msra.mxu2 %v485_v51 }
 0x12a   :  { %217 = vmatpush.msra.mxu2 %v484_v52 }
 0x12c   :  { %218 = vmatpush.msra.mxu2 %v483_v53 }
 0x12e   :  { %266 = vmatpush.msrb.mxu2 %v491_v54 }
 0x12f   :  { %486 = vmatmul.msk.f32.vlgmr.msra.gmra.mxu2 %vm101_vm0, %v96_v45 }
 0x130   :  { %267 = vmatpush.msrb.mxu2 %v490_v55 }
 0x132   :  { %268 = vmatpush.msrb.mxu2 %v489_v56 }
 0x134   :  { %316 = vmatpush.msra.mxu2 %v497_v57 }
 0x136   :  { %317 = vmatpush.msra.mxu2 %v496_v58 }
 0x137   :  { %492 = vmatmul.msk.f32.vlgmr.msrb.gmra.mxu2 %vm101_vm0, %v96_v45 }
 0x138   :  { %318 = vmatpush.msra.mxu2 %v495_v59 }
 0x13a   :  { %428 = vmatpush.msrb.mxu2 %v410_v6 }
 0x13c   :  { %429 = vmatpush.msrb.mxu2 %v408_v8 }
 0x13e   :  { %430 = vmatpush.msrb.mxu2 %v406_v10 }
 0x13f   :  { %498 = vmatmul.msk.f32.vlgmr.msra.gmra.mxu2 %vm101_vm0, %v96_v45 }
 0x19f   :  { %v395_v19 = vpop.f32.mrf.mxu1 }
 0x1aa   :  { %v173_v63 = vpop.f32.mrf.mxu2  ;;  %v196_v12 = vpop.f32.mrf.mxu3 }
 0x1ab   :  { %v197_v15 = vadd.f32 %v196_v12, %v173_v63 }
 0x1b2   :  { %v220_v1 = vpop.f32.mrf.mxu2 }
 0x1b3   :  { %243 = vmatpush.msra.mxu3 %v220_v1 }
 0x1b4   :  { %488 = vmatmul.msk.f32.vlgmr.msra.gmra.mxu3 %vm152_vm1, %v487_v0 }
 0x1ba   :  { %v270_v3 = vpop.f32.mrf.mxu2 }
 0x1bb   :  { %293 = vmatpush.msrb.mxu3 %v270_v3 }
 0x1bc   :  { %494 = vmatmul.msk.f32.vlgmr.msrb.gmra.mxu3 %vm152_vm1, %v493_v2 }
 0x1c2   :  { %v320_v5 = vpop.f32.mrf.mxu2 }
 0x1c3   :  { %343 = vmatpush.msra.mxu3 %v320_v5 }
 0x1c4   :  { %500 = vmatmul.msk.f32.vlgmr.msra.gmra.mxu3 %vm152_vm1, %v499_v4 }
 0x1c5   :  { %448 = vmatpush.msrb.mxu3 %v411_v7 }
 0x1c7   :  { %449 = vmatpush.msrb.mxu3 %v409_v9 }
 0x1c9   :  { %450 = vmatpush.msrb.mxu3 %v407_v11 }
 0x237   :  { %v245_v13 = vpop.f32.mrf.mxu3 }
 0x238   :  { %v248_v16 = vadd.f32 %v245_v13, %v197_v15 }
 0x23f   :  { %v295_v14 = vpop.f32.mrf.mxu3 }
 0x240   :  { %v298_v17 = vadd.f32 %v295_v14, %v248_v16 }
 0x247   :  { %v345_v18 = vpop.f32.mrf.mxu3 }
 0x248   :  { %v348_v20 = vadd.f32 %v345_v18, %v298_v17 }
 0x24a   :  { %v398_v22 = vadd.f32 %v395_v19, %v348_v20 }
 0x24c   :  { %v405_v23 = vadd.f32 %v403_v21, %v398_v22 }
 0x24e   :  { %507 = vmatmul.msk.f32.vlgmr.msrb.gmra.mxu2 %vm101_vm0, %v405_v23  ;;  %508 = vmatmul.msk.f32.vlgmr.msrb.gmra.mxu3 %vm101_vm0, %v405_v23 }
 0x2d1   :  { %v432_v24 = vpop.f32.mrf.mxu2  ;;  %v452_v25 = vpop.f32.mrf.mxu3 }
 0x2d2   :  { %v455_v26 = vmul.f32 %v432_v24, %v680_v34  ;;  %v456_v27 = vmul.f32 %v452_v25, %v685_v35 }
 0x2d4   :  { %457 = vst [vmem:[#allocation2] sm:$0xff] %v455_v26 }
 0x2d5   :  { %458 = vst [vmem:[#allocation2 + $0x8] sm:$0xff] %v456_v27 }
 0x2d6   :  { %469 = dma.vmem_to_hbm [thread:$0]  %s465_s2, 256, %s467_s0, [#allocation3]  }
 0x2d7   :  { %536 = dma.done.wait [#allocation3], 256  }
 0x2d8   :  { %537 = vsyncadd [#allocation3], 4294967040 }
 0x2d9   :  { %474 = vsyncpa [#allocation3], 1 }

</bundles_post_ra>
